<compile_context>
chip_gen: v5e
topology: v5e:2x2
jax: 0.10.0
libtpu: 0.0.40
codegen_flags: <defaults>
</compile_context>

<pallas_src>
import functools

import jax
import jax.numpy as jnp
from jax.experimental import pallas as pl
from jax.experimental.pallas import tpu as pltpu


def _round_up(n, m):
    return ((n + m - 1) // m) * m


def _pick_batch_tile(B, batch_tile):
    """Few, large grid steps; even step count for big batches (v7x has 2 TCs)."""
    b8 = _round_up(B, 8)
    n = pl.cdiv(b8, batch_tile)          # fewest steps at the max tile size
    if b8 >= 512:
        n = max(n, 2)                    # let both v7x TensorCores engage
    if n > 1 and n % 2:
        n += 1                           # even grid -> balanced megacore split
    return _round_up(pl.cdiv(b8, n), 8)


def _mlp_kernel(x_ref, w1_ref, b1_ref, w2_ref, b2_ref, w3_ref, b3_ref, o_ref):
    """Fused 3-layer MLP for one batch tile (bf16 operands, f32 accumulation)."""
    x = x_ref[...].astype(jnp.bfloat16)                                  # (bt, in_f)

    h1 = jnp.dot(x, w1_ref[...], preferred_element_type=jnp.float32)    # (bt, 512)
    h1 = jnp.maximum(h1 + b1_ref[...], 0.0).astype(jnp.bfloat16)

    h2 = jnp.dot(h1, w2_ref[...], preferred_element_type=jnp.float32)   # (bt, 256)
    h2 = jnp.maximum(h2 + b2_ref[...], 0.0).astype(jnp.bfloat16)

    y = jnp.dot(h2, w3_ref[...], preferred_element_type=jnp.float32)    # (bt, Np)
    o_ref[...] = (y + b3_ref[...]).astype(o_ref.dtype)                  # bf16 store


@functools.partial(jax.jit, static_argnames=("batch_tile",))
def net_forward(x, params, *, batch_tile=1024):
    """x: (B, in_feature) float32.

    params: w{1,2,3} of shape (fan_in, fan_out) and b{1,2,3} of (1, fan_out), f32.
    Returns (B, out_feature) float32.
    batch_tile: max rows per grid step. 1024 is safe on every generation
    (v7x 32 MiB scoped VMEM); v5e/v6e can use 2048.
    """
    B, in_f = x.shape
    w1, b1 = params["w1"], params["b1"]
    w2, b2 = params["w2"], params["b2"]
    w3, b3 = params["w3"], params["b3"]
    out_f = w3.shape[1]

    # Lane-dense output padding (only the tiny last-layer weight/bias get padded).
    Np = _round_up(max(out_f, 128), 128)

    bf = jnp.bfloat16
    w1_b = w1.astype(bf)                                          # (in_f, 512)
    w2_b = w2.astype(bf)                                          # (512, 256)
    w3_b = jnp.pad(w3.astype(bf), ((0, 0), (0, Np - out_f)))      # (256, Np)
    b1_f = b1.astype(jnp.float32)
    b2_f = b2.astype(jnp.float32)
    b3_f = jnp.pad(b3.astype(jnp.float32), ((0, 0), (0, Np - out_f)))

    # Adaptive batch tiling: padding waste is bounded to < 8 * n_steps rows, and
    # in the common aligned case no pad op is emitted at all.
    bt = _pick_batch_tile(B, batch_tile)
    Bp = _round_up(B, bt)
    if Bp != B:
        x = jnp.pad(x, ((0, Bp - B), (0, 0)))
    grid = (Bp // bt,)

    def resident(arr):
        # Constant block index -> fetched once, VMEM-resident across all tiles.
        return pl.BlockSpec(arr.shape, lambda i: (0, 0))

    y_pad = pl.pallas_call(
        _mlp_kernel,
        out_shape=jax.ShapeDtypeStruct((Bp, Np), bf),   # bf16 halves writeback+slice
        grid_spec=pltpu.PrefetchScalarGridSpec(
            num_scalar_prefetch=0,
            grid=grid,
            in_specs=[
                pl.BlockSpec((bt, in_f), lambda i: (i, 0)),   # x tile, f32, unpadded K
                resident(w1_b), resident(b1_f),
                resident(w2_b), resident(b2_f),
                resident(w3_b), resident(b3_f),
            ],
            out_specs=pl.BlockSpec((bt, Np), lambda i: (i, 0)),
        ),
        compiler_params=pltpu.CompilerParams(
            dimension_semantics=("parallel",),   # batch tiles shard across v7x TCs
        ),
    )(x, w1_b, b1_f, w2_b, b2_f, w3_b, b3_f)

    # Upcast inside the slice; padded rows/lanes never leave this function.
    return y_pad[:B, :out_f].astype(jnp.float32)


def init_params(key, in_feature, out_feature):
    """Deterministic init mimicking torch.nn.Linear default (uniform +-1/sqrt(fan_in))."""
    dims = [(in_feature, 512), (512, 256), (256, out_feature)]
    params = {}
    for idx, (fi, fo) in enumerate(dims, start=1):
        key, kw, kb = jax.random.split(key, 3)
        bound = 1.0 / (fi ** 0.5)
        params[f"w{idx}"] = jax.random.uniform(
            kw, (fi, fo), jnp.float32, minval=-bound, maxval=bound)
        params[f"b{idx}"] = jax.random.uniform(
            kb, (1, fo), jnp.float32, minval=-bound, maxval=bound)
    return params


def net_forward_ref_f32(x, params):
    """Pure-JAX f32 reference (matches the PyTorch module exactly)."""
    h = jnp.maximum(x @ params["w1"] + params["b1"], 0.0)
    h = jnp.maximum(h @ params["w2"] + params["b2"], 0.0)
    return h @ params["w3"] + params["b3"]


def net_forward_ref_bf16(x, params):
    """Pure-JAX reference with the same bf16-operand / f32-accum / bf16-store recipe."""
    bf = jnp.bfloat16
    h = jnp.dot(x.astype(bf), params["w1"].astype(bf),
                preferred_element_type=jnp.float32) + params["b1"]
    h = jnp.maximum(h, 0.0)
    h = jnp.dot(h.astype(bf), params["w2"].astype(bf),
                preferred_element_type=jnp.float32) + params["b2"]
    h = jnp.maximum(h, 0.0)
    y = jnp.dot(h.astype(bf), params["w3"].astype(bf),
                preferred_element_type=jnp.float32) + params["b3"]
    return y.astype(bf).astype(jnp.float32)


if __name__ == "__main__":
    in_feature, out_feature = 64, 10

    key = jax.random.PRNGKey(0)
    key, kp = jax.random.split(key)
    params = init_params(kp, in_feature, out_feature)

    def check(x, batch_tile=1024):
        y = jax.block_until_ready(net_forward(x, params, batch_tile=batch_tile))
        assert y.shape == (x.shape[0], out_feature)
        assert jnp.allclose(y, net_forward_ref_bf16(x, params),
                            atol=3e-2, rtol=3e-2), "mismatch vs bf16 reference"
        assert jnp.allclose(y, net_forward_ref_f32(x, params),
                            atol=2e-1, rtol=1e-1), "mismatch vs f32 reference"

    key, k1, k2, k3 = jax.random.split(key, 4)
    check(jax.random.normal(k1, (8, in_feature), jnp.float32))      # single small tile
    check(jax.random.normal(k2, (512, in_feature), jnp.float32))    # 2 parallel tiles
    check(jax.random.normal(k3, (100, in_feature), jnp.float32))    # ragged batch (padded)

    print("KERNEL_OK")
</pallas_src>

<mosaic_0001>
module attributes {stable_mosaic.version = 11 : i64} {
  func.func @_mlp_kernel(%arg0: i32, %arg1: memref<8x64xf32, #tpu.memory_space<vmem>>, %arg2: memref<64x512xbf16, #tpu.memory_space<vmem>>, %arg3: memref<1x512xf32, #tpu.memory_space<vmem>>, %arg4: memref<512x256xbf16, #tpu.memory_space<vmem>>, %arg5: memref<1x256xf32, #tpu.memory_space<vmem>>, %arg6: memref<256x128xbf16, #tpu.memory_space<vmem>>, %arg7: memref<1x128xf32, #tpu.memory_space<vmem>>, %arg8: memref<8x128xbf16, #tpu.memory_space<vmem>>) attributes {dimension_semantics = [#tpu.dimension_semantics<parallel>], iteration_bounds = array<i64: 1>, scalar_prefetch = 0 : i64, scratch_operands = 0 : i64, tpu.core_type = #tpu.core_type<tc>, window_params = [{transform_indices = @transform_0, window_bounds = array<i64: 8, 64>}, {pipeline_mode = #tpu.pipeline_mode<synchronous>, transform_indices = @transform_1, window_bounds = array<i64: 64, 512>}, {pipeline_mode = #tpu.pipeline_mode<synchronous>, transform_indices = @transform_2, window_bounds = array<i64: 1, 512>}, {pipeline_mode = #tpu.pipeline_mode<synchronous>, transform_indices = @transform_3, window_bounds = array<i64: 512, 256>}, {pipeline_mode = #tpu.pipeline_mode<synchronous>, transform_indices = @transform_4, window_bounds = array<i64: 1, 256>}, {pipeline_mode = #tpu.pipeline_mode<synchronous>, transform_indices = @transform_5, window_bounds = array<i64: 256, 128>}, {pipeline_mode = #tpu.pipeline_mode<synchronous>, transform_indices = @transform_6, window_bounds = array<i64: 1, 128>}, {transform_indices = @transform_7, window_bounds = array<i64: 8, 128>}]} {
    %c0 = arith.constant 0 : index
    %c0_0 = arith.constant 0 : index
    %0 = vector.load %arg1[%c0, %c0_0] : memref<8x64xf32, #tpu.memory_space<vmem>>, vector<8x64xf32>
    %1 = arith.truncf %0 : vector<8x64xf32> to vector<8x64xbf16>
    %c0_1 = arith.constant 0 : index
    %c0_2 = arith.constant 0 : index
    %2 = vector.load %arg2[%c0_1, %c0_2] : memref<64x512xbf16, #tpu.memory_space<vmem>>, vector<64x512xbf16>
    %cst = arith.constant dense<0.000000e+00> : vector<8x512xf32>
    %3 = tpu.matmul %1, %2, %cst {dimension_numbers = #tpu.dot_dimension_numbers<[1], [0], [0], [1], [0, 0, 1, 1], [], []>} : vector<8x64xbf16>, vector<64x512xbf16>, vector<8x512xf32> -> vector<8x512xf32>
    %c0_3 = arith.constant 0 : index
    %c0_4 = arith.constant 0 : index
    %4 = vector.load %arg3[%c0_3, %c0_4] : memref<1x512xf32, #tpu.memory_space<vmem>>, vector<1x512xf32>
    %5 = vector.broadcast %4 : vector<1x512xf32> to vector<8x512xf32>
    %6 = arith.addf %3, %5 : vector<8x512xf32>
    %cst_5 = arith.constant 0.000000e+00 : f32
    %7 = vector.broadcast %cst_5 : f32 to vector<8x512xf32>
    %8 = arith.maximumf %6, %7 : vector<8x512xf32>
    %9 = arith.truncf %8 : vector<8x512xf32> to vector<8x512xbf16>
    %c0_6 = arith.constant 0 : index
    %c0_7 = arith.constant 0 : index
    %10 = vector.load %arg4[%c0_6, %c0_7] : memref<512x256xbf16, #tpu.memory_space<vmem>>, vector<512x256xbf16>
    %cst_8 = arith.constant dense<0.000000e+00> : vector<8x256xf32>
    %11 = tpu.matmul %9, %10, %cst_8 {dimension_numbers = #tpu.dot_dimension_numbers<[1], [0], [0], [1], [0, 0, 1, 1], [], []>} : vector<8x512xbf16>, vector<512x256xbf16>, vector<8x256xf32> -> vector<8x256xf32>
    %c0_9 = arith.constant 0 : index
    %c0_10 = arith.constant 0 : index
    %12 = vector.load %arg5[%c0_9, %c0_10] : memref<1x256xf32, #tpu.memory_space<vmem>>, vector<1x256xf32>
    %13 = vector.broadcast %12 : vector<1x256xf32> to vector<8x256xf32>
    %14 = arith.addf %11, %13 : vector<8x256xf32>
    %cst_11 = arith.constant 0.000000e+00 : f32
    %15 = vector.broadcast %cst_11 : f32 to vector<8x256xf32>
    %16 = arith.maximumf %14, %15 : vector<8x256xf32>
    %17 = arith.truncf %16 : vector<8x256xf32> to vector<8x256xbf16>
    %c0_12 = arith.constant 0 : index
    %c0_13 = arith.constant 0 : index
    %18 = vector.load %arg6[%c0_12, %c0_13] : memref<256x128xbf16, #tpu.memory_space<vmem>>, vector<256x128xbf16>
    %cst_14 = arith.constant dense<0.000000e+00> : vector<8x128xf32>
    %19 = tpu.matmul %17, %18, %cst_14 {dimension_numbers = #tpu.dot_dimension_numbers<[1], [0], [0], [1], [0, 0, 1, 1], [], []>} : vector<8x256xbf16>, vector<256x128xbf16>, vector<8x128xf32> -> vector<8x128xf32>
    %c0_15 = arith.constant 0 : index
    %c0_16 = arith.constant 0 : index
    %20 = vector.load %arg7[%c0_15, %c0_16] : memref<1x128xf32, #tpu.memory_space<vmem>>, vector<1x128xf32>
    %21 = vector.broadcast %20 : vector<1x128xf32> to vector<8x128xf32>
    %22 = arith.addf %19, %21 : vector<8x128xf32>
    %23 = arith.truncf %22 : vector<8x128xf32> to vector<8x128xbf16>
    %c0_17 = arith.constant 0 : index
    %c0_18 = arith.constant 0 : index
    %24 = vector.load %arg8[%c0_17, %c0_18] : memref<8x128xbf16, #tpu.memory_space<vmem>>, vector<8x128xbf16>
    tpu.vector_store %arg8[%c0_17, %c0_18], %23 {strides = array<i32>} : memref<8x128xbf16, #tpu.memory_space<vmem>>, vector<8x128xbf16>,
    return
  }
  func.func @transform_0(%arg0: i32) -> (i32, i32) {
    %c0_i32 = arith.constant 0 : i32
    %c0_i32_0 = arith.constant 0 : i32
    return %arg0, %c0_i32 : i32, i32
  }
  func.func @transform_1(%arg0: i32) -> (i32, i32) {
    %c0_i32 = arith.constant 0 : i32
    %c0_i32_0 = arith.constant 0 : i32
    %c0_i32_1 = arith.constant 0 : i32
    return %c0_i32, %c0_i32_0 : i32, i32
  }
  func.func @transform_2(%arg0: i32) -> (i32, i32) {
    %c0_i32 = arith.constant 0 : i32
    %c0_i32_0 = arith.constant 0 : i32
    %c0_i32_1 = arith.constant 0 : i32
    return %c0_i32, %c0_i32_0 : i32, i32
  }
  func.func @transform_3(%arg0: i32) -> (i32, i32) {
    %c0_i32 = arith.constant 0 : i32
    %c0_i32_0 = arith.constant 0 : i32
    %c0_i32_1 = arith.constant 0 : i32
    return %c0_i32, %c0_i32_0 : i32, i32
  }
  func.func @transform_4(%arg0: i32) -> (i32, i32) {
    %c0_i32 = arith.constant 0 : i32
    %c0_i32_0 = arith.constant 0 : i32
    %c0_i32_1 = arith.constant 0 : i32
    return %c0_i32, %c0_i32_0 : i32, i32
  }
  func.func @transform_5(%arg0: i32) -> (i32, i32) {
    %c0_i32 = arith.constant 0 : i32
    %c0_i32_0 = arith.constant 0 : i32
    %c0_i32_1 = arith.constant 0 : i32
    return %c0_i32, %c0_i32_0 : i32, i32
  }
  func.func @transform_6(%arg0: i32) -> (i32, i32) {
    %c0_i32 = arith.constant 0 : i32
    %c0_i32_0 = arith.constant 0 : i32
    %c0_i32_1 = arith.constant 0 : i32
    return %c0_i32, %c0_i32_0 : i32, i32
  }
  func.func @transform_7(%arg0: i32) -> (i32, i32) {
    %c0_i32 = arith.constant 0 : i32
    %c0_i32_0 = arith.constant 0 : i32
    return %arg0, %c0_i32 : i32, i32
  }
}

</mosaic_0001>

<bundles_post_ra>
// kernel: net_forward.1
= control target key start
LH: loop header
LB: loop body
LE: loop exit
PB: predicated region body
PF: predicated region fallthrough
CT: control target
= control target key end

     0   :  { %vm135_vm0 = vcmask 523264   ;;  %s1939_s1 = inlined_call_operand.vmem [shape: bf16[64,512], index: 1, kind: input, shape index: {}]   ;;  %s1940_s0 = inlined_call_operand.vmem [shape: f32[8,64], index: 0, kind: input, shape index: {}]   ;;  %s1941_s3 = inlined_call_operand.vmem [shape: bf16[512,256], index: 3, kind: input, shape index: {}]   ;;  %s1942_s2 = inlined_call_operand.vmem [shape: f32[1,512], index: 2, kind: input, shape index: {}]   ;;  %s1943_s6 = inlined_call_operand.vmem [shape: f32[1,128], index: 6, kind: input, shape index: {}]   ;;  %s1944_s5 = inlined_call_operand.vmem [shape: bf16[256,128], index: 5, kind: input, shape index: {}]   ;;  %s1945_s4 = inlined_call_operand.vmem [shape: f32[1,256], index: 4, kind: input, shape index: {}]   ;;  %s1946_s7 = inlined_call_operand.vmem [shape: bf16[8,128], index: 7, kind: output, shape index: {}]  }
   0x1   :  { %v911_v0 = vld [vmem:[%s1939_s1 + $0x60] sm:$0xf]  ;;  %v1263_v1 = vld [vmem:[%s1939_s1 + $0x6c] sm:$0xf0]  ;;  %v1261_v2 = vld [vmem:[%s1939_s1 + $0x64] sm:$0xf] }
   0x2   :  { %v912_v3 = vor.u32 %v1263_v1, %v911_v0  ;;  %v913_v4 = vld [vmem:[%s1939_s1 + $0x70] sm:$0xf0]  ;;  %v895_v5 = vld [vmem:[%s1939_s1 + $0x40] sm:$0xf]  ;;  %v1259_v6 = vld [vmem:[%s1939_s1 + $0x4c] sm:$0xf0] }
   0x3   :  { %v916_v7 = vor.u32 %v1261_v2, %v913_v4  ;;  %v1257_v8 = vld [vmem:[%s1939_s1 + $0x44] sm:$0xf]  ;;  %v897_v9 = vld [vmem:[%s1939_s1 + $0x50] sm:$0xf0]  ;;  %v896_v10 = vor.u32 %v1259_v6, %v895_v5  ;;  %v879_v12 = vld [vmem:[%s1939_s1 + $0x20] sm:$0xf] }
   0x4   :  { %143 = vmatpush.bf16.msra.mxu2 %v912_v3  ;;  %v900_v11 = vor.u32 %v1257_v8, %v897_v9  ;;  %v1255_v13 = vld [vmem:[%s1939_s1 + $0x2c] sm:$0xf0]  ;;  %v1253_v14 = vld [vmem:[%s1939_s1 + $0x24] sm:$0xf]  ;;  %v881_v15 = vld [vmem:[%s1939_s1 + $0x30] sm:$0xf0] }
   0x5   :  { %156 = vmatpush.bf16.msra.mxu3 %v916_v7  ;;  %v880_v16 = vor.u32 %v1255_v13, %v879_v12  ;;  %v884_v17 = vor.u32 %v1253_v14, %v881_v15  ;;  %v863_v18 = vld [vmem:[%s1939_s1] sm:$0xf]  ;;  %v1251_v19 = vld [vmem:[%s1939_s1 + $0xc] sm:$0xf0]  ;;  %v1249_v20 = vld [vmem:[%s1939_s1 + $0x4] sm:$0xf] }
   0x6   :  { %v865_v21 = vld [vmem:[%s1939_s1 + $0x10] sm:$0xf0]  ;;  %v919_v22 = vld [vmem:[%s1939_s1 + $0x68] sm:$0xf]  ;;  %v1264_v23 = vld [vmem:[%s1939_s1 + $0x74] sm:$0xf0]  ;;  %v864_v27 = vor.u32 %v1251_v19, %v863_v18 }
   0x7   :  { %v27_v24 = vld [vmem:[%s1940_s0] sm:$0xff]  ;;  %v1262_v25 = vld [vmem:[%s1939_s1 + $0x6c] sm:$0xf]  ;;  %v921_v26 = vld [vmem:[%s1939_s1 + $0x78] sm:$0xf0]  ;;  %v868_v32 = vor.u32 %v1249_v20, %v865_v21  ;;  %v920_v33 = vor.u32 %v1264_v23, %v919_v22 }
   0x8   :  { %144 = vmatpush.bf16.msra.mxu2 %v896_v10  ;;  %v903_v28 = vld [vmem:[%s1939_s1 + $0x48] sm:$0xf]  ;;  %v987_v29 = vld [vmem:[%s1941_s3 + $0x70] sm:$0xf]  ;;  %v1280_v30 = vld [vmem:[%s1941_s3 + $0x74] sm:$0xf0]  ;;  %v924_v38 = vor.u32 %v1262_v25, %v921_v26  ;;  %v1479_v43 = vpack.c.bf16 %v27_v24, %v27_v24 }
   0x9   :  { %157 = vmatpush.bf16.msra.mxu3 %v900_v11  ;;  %v1051_v31 = vld [vmem:[%s1941_s3 + $0xf0] sm:$0xf]  ;;  %v988_v34 = vor.u32 %v1280_v30, %v987_v29  ;;  %v1296_v35 = vld [vmem:[%s1941_s3 + $0xf4] sm:$0xf0]  ;;  %v979_v36 = vld [vmem:[%s1941_s3 + $0x60] sm:$0xf] }
   0xa   :  { %v1278_v37 = vld [vmem:[%s1941_s3 + $0x64] sm:$0xf0]  ;;  %v1260_v39 = vld [vmem:[%s1939_s1 + $0x54] sm:$0xf0]  ;;  %v1052_v40 = vor.u32 %v1296_v35, %v1051_v31  ;;  %v1043_v41 = vld [vmem:[%s1941_s3 + $0xe0] sm:$0xf] }
   0xb   :  { %v1294_v42 = vld [vmem:[%s1941_s3 + $0xe4] sm:$0xf0]  ;;  %v1258_v44 = vld [vmem:[%s1939_s1 + $0x4c] sm:$0xf]  ;;  %v905_v45 = vld [vmem:[%s1939_s1 + $0x58] sm:$0xf0]  ;;  %589 = vmatpush.bf16.msra.mxu0 %v988_v34  ;;  %v980_v46 = vor.u32 %v1278_v37, %v979_v36  ;;  %v904_v50 = vor.u32 %v1260_v39, %v903_v28 }
   0xc   :  { %145 = vmatpush.bf16.msra.mxu2 %v880_v16  ;;  %602 = vmatpush.bf16.msra.mxu1 %v1052_v40  ;;  %v1044_v47 = vor.u32 %v1294_v42, %v1043_v41  ;;  %v971_v48 = vld [vmem:[%s1941_s3 + $0x50] sm:$0xf]  ;;  %v1276_v49 = vld [vmem:[%s1941_s3 + $0x54] sm:$0xf0]  ;;  %v908_v53 = vor.u32 %v1258_v44, %v905_v45  ;;  %v887_v54 = vld [vmem:[%s1939_s1 + $0x28] sm:$0xf] }
   0xd   :  { %158 = vmatpush.bf16.msra.mxu3 %v884_v17  ;;  %v1035_v51 = vld [vmem:[%s1941_s3 + $0xd0] sm:$0xf]  ;;  %v1292_v52 = vld [vmem:[%s1941_s3 + $0xd4] sm:$0xf0]  ;;  %v1254_v56 = vld [vmem:[%s1939_s1 + $0x2c] sm:$0xf]  ;;  %v972_v58 = vor.u32 %v1276_v49, %v971_v48 }
   0xe   :  { %v1256_v55 = vld [vmem:[%s1939_s1 + $0x34] sm:$0xf0]  ;;  %v889_v57 = vld [vmem:[%s1939_s1 + $0x38] sm:$0xf0]  ;;  %v1036_v59 = vor.u32 %v1292_v52, %v1035_v51  ;;  %v963_v60 = vld [vmem:[%s1941_s3 + $0x40] sm:$0xf] }
   0xf   :  { %590 = vmatpush.bf16.msra.mxu0 %v980_v46  ;;  %v1274_v61 = vld [vmem:[%s1941_s3 + $0x44] sm:$0xf0]  ;;  %v888_v62 = vor.u32 %v1256_v55, %v887_v54  ;;  %v1027_v0 = vld [vmem:[%s1941_s3 + $0xc0] sm:$0xf]  ;;  %v892_v2 = vor.u32 %v1254_v56, %v889_v57  ;;  %v1252_v3 = vld [vmem:[%s1939_s1 + $0x14] sm:$0xf0] }
  0x10   :  { %146 = vmatpush.bf16.msra.mxu2 %v864_v27  ;;  %603 = vmatpush.bf16.msra.mxu1 %v1044_v47  ;;  %v871_v63 = vld [vmem:[%s1939_s1 + $0x8] sm:$0xf]  ;;  %v1250_v4 = vld [vmem:[%s1939_s1 + $0xc] sm:$0xf]  ;;  %v873_v5 = vld [vmem:[%s1939_s1 + $0x18] sm:$0xf0]  ;;  %v964_v6 = vor.u32 %v1274_v61, %v963_v60 }
  0x11   :  { %159 = vmatpush.bf16.msra.mxu3 %v868_v32  ;;  %v1290_v1 = vld [vmem:[%s1941_s3 + $0xc4] sm:$0xf0]  ;;  %v955_v7 = vld [vmem:[%s1941_s3 + $0x30] sm:$0xf]  ;;  %v1312_v9 = vld [vmem:[%s1941_s3 + $0x174] sm:$0xf0]  ;;  %v872_v14 = vor.u32 %v1252_v3, %v871_v63  ;;  %v876_v17 = vor.u32 %v1250_v4, %v873_v5 }
  0x12   :  { %v1115_v8 = vld [vmem:[%s1941_s3 + $0x170] sm:$0xf]  ;;  %v1028_v10 = vor.u32 %v1290_v1, %v1027_v0  ;;  %v1272_v11 = vld [vmem:[%s1941_s3 + $0x34] sm:$0xf0]  ;;  %v1107_v21 = vld [vmem:[%s1941_s3 + $0x160] sm:$0xf] }
  0x13   :  { %925 = vmatmul.msk.bf16.vlgmr.msra.gmra.mxu2 %vm135_vm0, %v1479_v43  ;;  %591 = vmatpush.bf16.msra.mxu0 %v972_v58  ;;  %v1179_v12 = vld [vmem:[%s1941_s3 + $0x1f0] sm:$0xf]  ;;  %v1328_v13 = vld [vmem:[%s1941_s3 + $0x1f4] sm:$0xf0]  ;;  %v1116_v18 = vor.u32 %v1312_v9, %v1115_v8  ;;  %v956_v19 = vor.u32 %v1272_v11, %v955_v7  ;;  %v1310_v22 = vld [vmem:[%s1941_s3 + $0x164] sm:$0xf0] }
  0x14   :  { %169 = vmatpush.bf16.msrb.mxu2 %v920_v33  ;;  %926 = vmatmul.msk.bf16.vlgmr.msra.gmra.mxu3 %vm135_vm0, %v1479_v43  ;;  %v1019_v15 = vld [vmem:[%s1941_s3 + $0xb0] sm:$0xf]  ;;  %v1288_v16 = vld [vmem:[%s1941_s3 + $0xb4] sm:$0xf0]  ;;  %v1180_v20 = vor.u32 %v1328_v13, %v1179_v12  ;;  %v947_v24 = vld [vmem:[%s1941_s3 + $0x20] sm:$0xf]  ;;  %v1108_v28 = vor.u32 %v1310_v22, %v1107_v21 }
  0x15   :  { %182 = vmatpush.bf16.msrb.mxu3 %v924_v38  ;;  %604 = vmatpush.bf16.msra.mxu1 %v1036_v59  ;;  %v1020_v23 = vor.u32 %v1288_v16, %v1019_v15  ;;  %v1270_v25 = vld [vmem:[%s1941_s3 + $0x24] sm:$0xf0]  ;;  %v1011_v26 = vld [vmem:[%s1941_s3 + $0xa0] sm:$0xf]  ;;  %v1099_v32 = vld [vmem:[%s1941_s3 + $0x150] sm:$0xf] }
  0x16   :  { %v1286_v27 = vld [vmem:[%s1941_s3 + $0xa4] sm:$0xf0]  ;;  %v1171_v29 = vld [vmem:[%s1941_s3 + $0x1e0] sm:$0xf]  ;;  %v948_v31 = vor.u32 %v1270_v25, %v947_v24  ;;  %v1308_v33 = vld [vmem:[%s1941_s3 + $0x154] sm:$0xf0] }
  0x17   :  { %592 = vmatpush.bf16.msra.mxu0 %v964_v6  ;;  %v1326_v30 = vld [vmem:[%s1941_s3 + $0x1e4] sm:$0xf0]  ;;  %v1012_v34 = vor.u32 %v1286_v27, %v1011_v26  ;;  %v939_v35 = vld [vmem:[%s1941_s3 + $0x10] sm:$0xf]  ;;  %v1268_v36 = vld [vmem:[%s1941_s3 + $0x14] sm:$0xf0]  ;;  %v1100_v40 = vor.u32 %v1308_v33, %v1099_v32 }
  0x18   :  { %170 = vmatpush.bf16.msrb.mxu2 %v904_v50  ;;  %v1172_v37 = vor.u32 %v1326_v30, %v1171_v29  ;;  %v1003_v38 = vld [vmem:[%s1941_s3 + $0x90] sm:$0xf]  ;;  %v1284_v39 = vld [vmem:[%s1941_s3 + $0x94] sm:$0xf0]  ;;  %v940_v44 = vor.u32 %v1268_v36, %v939_v35  ;;  %v931_v45 = vld [vmem:[%s1941_s3] sm:$0xf] }
  0x19   :  { %183 = vmatpush.bf16.msrb.mxu3 %v908_v53  ;;  %605 = vmatpush.bf16.msra.mxu1 %v1028_v10  ;;  %v1163_v41 = vld [vmem:[%s1941_s3 + $0x1d0] sm:$0xf]  ;;  %v1324_v42 = vld [vmem:[%s1941_s3 + $0x1d4] sm:$0xf0]  ;;  %v1091_v46 = vld [vmem:[%s1941_s3 + $0x140] sm:$0xf]  ;;  %v1004_v48 = vor.u32 %v1284_v39, %v1003_v38 }
  0x1a   :  { %v1306_v47 = vld [vmem:[%s1941_s3 + $0x144] sm:$0xf0]  ;;  %v995_v50 = vld [vmem:[%s1941_s3 + $0x80] sm:$0xf]  ;;  %v1164_v52 = vor.u32 %v1324_v42, %v1163_v41  ;;  %v1279_v53 = vld [vmem:[%s1941_s3 + $0x74] sm:$0xf] }
  0x1b   :  { %593 = vmatpush.bf16.msra.mxu0 %v956_v19  ;;  %v1266_v49 = vld [vmem:[%s1941_s3 + $0x4] sm:$0xf0]  ;;  %v989_v54 = vld [vmem:[%s1941_s3 + $0x78] sm:$0xf0]  ;;  %v1092_v55 = vor.u32 %v1306_v47, %v1091_v46  ;;  %v1295_v57 = vld [vmem:[%s1941_s3 + $0xf4] sm:$0xf] }
  0x1c   :  { %171 = vmatpush.bf16.msrb.mxu2 %v888_v62  ;;  %v1282_v51 = vld [vmem:[%s1941_s3 + $0x84] sm:$0xf0]  ;;  %v1053_v58 = vld [vmem:[%s1941_s3 + $0xf8] sm:$0xf0]  ;;  %v932_v59 = vor.u32 %v1266_v49, %v931_v45  ;;  %v1083_v60 = vld [vmem:[%s1941_s3 + $0x130] sm:$0xf]  ;;  %v992_v63 = vor.u32 %v1279_v53, %v989_v54 }
  0x1d   :  { %184 = vmatpush.bf16.msrb.mxu3 %v892_v2  ;;  %606 = vmatpush.bf16.msra.mxu1 %v1020_v23  ;;  %v1322_v56 = vld [vmem:[%s1941_s3 + $0x1c4] sm:$0xf0]  ;;  %v1304_v61 = vld [vmem:[%s1941_s3 + $0x134] sm:$0xf0]  ;;  %v996_v62 = vor.u32 %v1282_v51, %v995_v50  ;;  %v1056_v1 = vor.u32 %v1295_v57, %v1053_v58  ;;  %v1147_v2 = vld [vmem:[%s1941_s3 + $0x1b0] sm:$0xf] }
  0x1e   :  { %v1277_v3 = vld [vmem:[%s1941_s3 + $0x64] sm:$0xf]  ;;  %v981_v4 = vld [vmem:[%s1941_s3 + $0x68] sm:$0xf0]  ;;  %v1084_v5 = vor.u32 %v1304_v61, %v1083_v60  ;;  %v1320_v6 = vld [vmem:[%s1941_s3 + $0x1b4] sm:$0xf0] }
  0x1f   :  { %594 = vmatpush.bf16.msra.mxu0 %v948_v31  ;;  %v1293_v7 = vld [vmem:[%s1941_s3 + $0xe4] sm:$0xf]  ;;  %v1045_v8 = vld [vmem:[%s1941_s3 + $0xe8] sm:$0xf0]  ;;  %v1075_v9 = vld [vmem:[%s1941_s3 + $0x120] sm:$0xf]  ;;  %v984_v11 = vor.u32 %v1277_v3, %v981_v4  ;;  %v1148_v12 = vor.u32 %v1320_v6, %v1147_v2 }
  0x20   :  { %172 = vmatpush.bf16.msrb.mxu2 %v872_v14  ;;  %v1302_v10 = vld [vmem:[%s1941_s3 + $0x124] sm:$0xf0]  ;;  %v1048_v13 = vor.u32 %v1293_v7, %v1045_v8  ;;  %v1139_v15 = vld [vmem:[%s1941_s3 + $0x1a0] sm:$0xf]  ;;  %v973_v19 = vld [vmem:[%s1941_s3 + $0x58] sm:$0xf0] }
  0x21   :  { %185 = vmatpush.bf16.msrb.mxu3 %v876_v17  ;;  %607 = vmatpush.bf16.msra.mxu1 %v1012_v34  ;;  %v1076_v14 = vor.u32 %v1302_v10, %v1075_v9  ;;  %v1318_v16 = vld [vmem:[%s1941_s3 + $0x1a4] sm:$0xf0]  ;;  %v1037_v22 = vld [vmem:[%s1941_s3 + $0xd8] sm:$0xf0]  ;;  %v1067_v24 = vld [vmem:[%s1941_s3 + $0x110] sm:$0xf] }
  0x22   :  { %v1140_v17 = vor.u32 %v1318_v16, %v1139_v15  ;;  %v1300_v25 = vld [vmem:[%s1941_s3 + $0x114] sm:$0xf0]  ;;  %v1131_v26 = vld [vmem:[%s1941_s3 + $0x190] sm:$0xf]  ;;  %v1273_v29 = vld [vmem:[%s1941_s3 + $0x44] sm:$0xf] }
  0x23   :  { %927 = vmatmul.msk.bf16.vlgmr.msrb.gmra.mxu2 %vm135_vm0, %v1479_v43  ;;  %595 = vmatpush.bf16.msra.mxu0 %v940_v44  ;;  %v1068_v27 = vor.u32 %v1300_v25, %v1067_v24  ;;  %v965_v30 = vld [vmem:[%s1941_s3 + $0x48] sm:$0xf0]  ;;  %v1289_v33 = vld [vmem:[%s1941_s3 + $0xc4] sm:$0xf]  ;;  %v1059_v36 = vld [vmem:[%s1941_s3 + $0x100] sm:$0xf] }
  0x24   :  { %615 = vmatpush.bf16.msra.mxu2 %v1116_v18  ;;  %928 = vmatmul.msk.bf16.vlgmr.msrb.gmra.mxu3 %vm135_vm0, %v1479_v43  ;;  %v1155_v43 = vld [vmem:[%s1941_s3 + $0x1c0] sm:$0xf]  ;;  %v1275_v18 = vld [vmem:[%s1941_s3 + $0x54] sm:$0xf]  ;;  %v968_v32 = vor.u32 %v1273_v29, %v965_v30  ;;  %v1029_v34 = vld [vmem:[%s1941_s3 + $0xc8] sm:$0xf0] }
  0x25   :  { %628 = vmatpush.bf16.msra.mxu3 %v1180_v20  ;;  %608 = vmatpush.bf16.msra.mxu1 %v1004_v48  ;;  %v1156_v0 = vor.u32 %v1322_v56, %v1155_v43  ;;  %v1291_v20 = vld [vmem:[%s1941_s3 + $0xd4] sm:$0xf]  ;;  %v976_v21 = vor.u32 %v1275_v18, %v973_v19  ;;  %v1032_v35 = vor.u32 %v1289_v33, %v1029_v34  ;;  %v1123_v38 = vld [vmem:[%s1941_s3 + $0x180] sm:$0xf]  ;;  %v957_v42 = vld [vmem:[%s1941_s3 + $0x38] sm:$0xf0] }
  0x26   :  { %v1040_v23 = vor.u32 %v1291_v20, %v1037_v22  ;;  %v1271_v41 = vld [vmem:[%s1941_s3 + $0x34] sm:$0xf]  ;;  %v1021_v47 = vld [vmem:[%s1941_s3 + $0xb8] sm:$0xf0]  ;;  %v1269_v54 = vld [vmem:[%s1941_s3 + $0x24] sm:$0xf] }
  0x27   :  { %596 = vmatpush.bf16.msra.mxu0 %v932_v59  ;;  %v960_v45 = vor.u32 %v1271_v41, %v957_v42  ;;  %v1287_v46 = vld [vmem:[%s1941_s3 + $0xb4] sm:$0xf]  ;;  %v1117_v50 = vld [vmem:[%s1941_s3 + $0x178] sm:$0xf0]  ;;  %v1285_v56 = vld [vmem:[%s1941_s3 + $0xa4] sm:$0xf] }
  0x28   :  { %616 = vmatpush.bf16.msra.mxu2 %v1108_v28  ;;  %v1316_v28 = vld [vmem:[%s1941_s3 + $0x194] sm:$0xf0]  ;;  %v1311_v48 = vld [vmem:[%s1941_s3 + $0x174] sm:$0xf]  ;;  %v1024_v49 = vor.u32 %v1287_v46, %v1021_v47  ;;  %v1013_v58 = vld [vmem:[%s1941_s3 + $0xa8] sm:$0xf0] }
  0x29   :  { %629 = vmatpush.bf16.msra.mxu3 %v1172_v37  ;;  %609 = vmatpush.bf16.msra.mxu1 %v996_v62  ;;  %v1132_v31 = vor.u32 %v1316_v28, %v1131_v26  ;;  %v1298_v37 = vld [vmem:[%s1941_s3 + $0x104] sm:$0xf0]  ;;  %v1327_v51 = vld [vmem:[%s1941_s3 + $0x1f4] sm:$0xf]  ;;  %v1120_v43 = vor.u32 %v1311_v48, %v1117_v50  ;;  %v1309_v59 = vld [vmem:[%s1941_s3 + $0x164] sm:$0xf]  ;;  %v1016_v61 = vor.u32 %v1285_v56, %v1013_v58 }
  0x2a   :  { %v1060_v39 = vor.u32 %v1298_v37, %v1059_v36  ;;  %v1109_v60 = vld [vmem:[%s1941_s3 + $0x168] sm:$0xf0]  ;;  %v1267_v2 = vld [vmem:[%s1941_s3 + $0x14] sm:$0xf]  ;;  %v941_v3 = vld [vmem:[%s1941_s3 + $0x18] sm:$0xf0] }
  0x2b   :  { %641 = vmatpush.bf16.msrb.mxu0 %v992_v63  ;;  %v1112_v62 = vor.u32 %v1309_v59, %v1109_v60  ;;  %v1325_v63 = vld [vmem:[%s1941_s3 + $0x1e4] sm:$0xf]  ;;  %v1283_v4 = vld [vmem:[%s1941_s3 + $0x94] sm:$0xf]  ;;  %v1005_v6 = vld [vmem:[%s1941_s3 + $0x98] sm:$0xf0] }
  0x2c   :  { %617 = vmatpush.bf16.msra.mxu2 %v1100_v40  ;;  %v1314_v40 = vld [vmem:[%s1941_s3 + $0x184] sm:$0xf0]  ;;  %v1307_v7 = vld [vmem:[%s1941_s3 + $0x154] sm:$0xf]  ;;  %v1101_v8 = vld [vmem:[%s1941_s3 + $0x158] sm:$0xf0]  ;;  %v1008_v9 = vor.u32 %v1283_v4, %v1005_v6 }
  0x2d   :  { %630 = vmatpush.bf16.msra.mxu3 %v1164_v52  ;;  %654 = vmatpush.bf16.msrb.mxu1 %v1056_v1  ;;  %v1124_v44 = vor.u32 %v1314_v40, %v1123_v38  ;;  %v1181_v52 = vld [vmem:[%s1941_s3 + $0x1f8] sm:$0xf0]  ;;  %v1104_v10 = vor.u32 %v1307_v7, %v1101_v8  ;;  %v933_v15 = vld [vmem:[%s1941_s3 + $0x8] sm:$0xf0]  ;;  %v1281_v16 = vld [vmem:[%s1941_s3 + $0x84] sm:$0xf] }
  0x2e   :  { %v1184_v53 = vor.u32 %v1327_v51, %v1181_v52  ;;  %v997_v18 = vld [vmem:[%s1941_s3 + $0x88] sm:$0xf0]  ;;  %v1305_v19 = vld [vmem:[%s1941_s3 + $0x144] sm:$0xf]  ;;  %v1303_v26 = vld [vmem:[%s1941_s3 + $0x134] sm:$0xf] }
  0x2f   :  { %642 = vmatpush.bf16.msrb.mxu0 %v984_v11  ;;  %v1323_v11 = vld [vmem:[%s1941_s3 + $0x1d4] sm:$0xf]  ;;  %v1093_v20 = vld [vmem:[%s1941_s3 + $0x148] sm:$0xf0]  ;;  %v1149_v30 = vld [vmem:[%s1941_s3 + $0x1b8] sm:$0xf0] }
  0x30   :  { %618 = vmatpush.bf16.msra.mxu2 %v1092_v55  ;;  %v949_v55 = vld [vmem:[%s1941_s3 + $0x28] sm:$0xf0]  ;;  %v1096_v22 = vor.u32 %v1305_v19, %v1093_v20  ;;  %v1319_v28 = vld [vmem:[%s1941_s3 + $0x1b4] sm:$0xf]  ;;  %v1317_v34 = vld [vmem:[%s1941_s3 + $0x1a4] sm:$0xf] }
  0x31   :  { %631 = vmatpush.bf16.msra.mxu3 %v1156_v0  ;;  %655 = vmatpush.bf16.msrb.mxu1 %v1048_v13  ;;  %v952_v57 = vor.u32 %v1269_v54, %v949_v55  ;;  %v1173_v0 = vld [vmem:[%s1941_s3 + $0x1e8] sm:$0xf0]  ;;  %v1069_v40 = vld [vmem:[%s1941_s3 + $0x118] sm:$0xf0]  ;;  %v1315_v41 = vld [vmem:[%s1941_s3 + $0x194] sm:$0xf] }
  0x32   :  { %v1176_v1 = vor.u32 %v1325_v63, %v1173_v0  ;;  %v1157_v24 = vld [vmem:[%s1941_s3 + $0x1c8] sm:$0xf0]  ;;  %v1133_v42 = vld [vmem:[%s1941_s3 + $0x198] sm:$0xf0] }
  0x33   :  { %643 = vmatpush.bf16.msrb.mxu0 %v976_v21  ;;  %v1000_v21 = vor.u32 %v1281_v16, %v997_v18  ;;  %v1077_v33 = vld [vmem:[%s1941_s3 + $0x128] sm:$0xf0]  ;;  %v1136_v47 = vor.u32 %v1315_v41, %v1133_v42  ;;  %v1344_v16 = vld [vmem:[%s1944_s5 + $0x78] sm:$0xff]  ;;  %v1343_v18 = vld [vmem:[%s1944_s5 + $0x70] sm:$0xff] }
  0x34   :  { %619 = vmatpush.bf16.msra.mxu2 %v1084_v5  ;;  %v944_v5 = vor.u32 %v1267_v2, %v941_v3  ;;  %v1141_v36 = vld [vmem:[%s1941_s3 + $0x1a8] sm:$0xf0] }
  0x35   :  { %632 = vmatpush.bf16.msra.mxu3 %v1148_v12  ;;  %656 = vmatpush.bf16.msrb.mxu1 %v1040_v23  ;;  %v1165_v12 = vld [vmem:[%s1941_s3 + $0x1d8] sm:$0xf0]  ;;  %v1321_v23 = vld [vmem:[%s1941_s3 + $0x1c4] sm:$0xf]  ;;  %v1144_v38 = vor.u32 %v1317_v34, %v1141_v36  ;;  %v1061_v50 = vld [vmem:[%s1941_s3 + $0x108] sm:$0xf0] }
  0x36   :  { %v1168_v13 = vor.u32 %v1323_v11, %v1165_v12  ;;  %v1160_v25 = vor.u32 %v1321_v23, %v1157_v24  ;;  %v1336_v11 = vld [vmem:[%s1944_s5 + $0x38] sm:$0xff]  ;;  %v1335_v12 = vld [vmem:[%s1944_s5 + $0x30] sm:$0xff]  ;;  %v1330_v19 = vld [vmem:[%s1944_s5 + $0x8] sm:$0xff] }
  0x37   :  { %644 = vmatpush.bf16.msrb.mxu0 %v968_v32  ;;  %v1301_v32 = vld [vmem:[%s1941_s3 + $0x124] sm:$0xf]  ;;  %v1342_v20 = vld [vmem:[%s1944_s5 + $0x68] sm:$0xff]  ;;  %v1340_v23 = vld [vmem:[%s1944_s5 + $0x58] sm:$0xff] }
  0x38   :  { %620 = vmatpush.bf16.msra.mxu2 %v1076_v14  ;;  %v1265_v14 = vld [vmem:[%s1941_s3 + $0x4] sm:$0xf]  ;;  %v1080_v37 = vor.u32 %v1301_v32, %v1077_v33 }
  0x39   :  { %633 = vmatpush.bf16.msra.mxu3 %v1140_v17  ;;  %657 = vmatpush.bf16.msrb.mxu1 %v1032_v35  ;;  %v936_v17 = vor.u32 %v1265_v14, %v933_v15  ;;  %v45_v35 = vld [vmem:[%s1942_s2] sm:$0xf]  ;;  %v1332_v15 = vld [vmem:[%s1944_s5 + $0x18] sm:$0xff] }
  0x3a   :  { %v49_v63 = vperm.slane %v45_v35, 2  ;;  %v50_v0 = vperm.slane %v45_v35, 3  ;;  %v1333_v14 = vld [vmem:[%s1944_s5 + $0x20] sm:$0xff] }
  0x3b   :  { %645 = vmatpush.bf16.msrb.mxu0 %v960_v45  ;;  %v48_v45 = vperm.slane %v45_v35, 1 }
  0x3c   :  { %621 = vmatpush.bf16.msra.mxu2 %v1068_v27  ;;  %v1085_v27 = vld [vmem:[%s1941_s3 + $0x138] sm:$0xf0] }
  0x3d   :  { %634 = vmatpush.bf16.msra.mxu3 %v1132_v31  ;;  %658 = vmatpush.bf16.msrb.mxu1 %v1024_v49  ;;  %v1088_v29 = vor.u32 %v1303_v26, %v1085_v27  ;;  %v1152_v31 = vor.u32 %v1319_v28, %v1149_v30  ;;  %v1297_v49 = vld [vmem:[%s1941_s3 + $0x104] sm:$0xf]  ;;  %v1339_v26 = vld [vmem:[%s1944_s5 + $0x50] sm:$0xff]  ;;  %v1338_v27 = vld [vmem:[%s1944_s5 + $0x48] sm:$0xff] }
  0x3e   :  { %v1064_v56 = vor.u32 %v1297_v49, %v1061_v50  ;;  %v263_v30 = vld [vmem:[%s1945_s4] sm:$0x3] }
  0x3f   :  { %646 = vmatpush.bf16.msrb.mxu0 %v952_v57  ;;  %v265_v32 = vperm.slane %v263_v30, 0 }
  0x40   :  { %622 = vmatpush.bf16.msra.mxu2 %v1060_v39  ;;  %v1299_v39 = vld [vmem:[%s1941_s3 + $0x114] sm:$0xf] }
  0x41   :  { %635 = vmatpush.bf16.msra.mxu3 %v1124_v44  ;;  %659 = vmatpush.bf16.msrb.mxu1 %v1016_v61  ;;  %v47_v44 = vperm.slane %v45_v35, 0  ;;  %v1072_v46 = vor.u32 %v1299_v39, %v1069_v40 }
  0x43   :  { %647 = vmatpush.bf16.msrb.mxu0 %v944_v5 }
  0x44   :  { %667 = vmatpush.bf16.msrb.mxu2 %v1120_v43  ;;  %v1313_v43 = vld [vmem:[%s1941_s3 + $0x184] sm:$0xf] }
  0x45   :  { %680 = vmatpush.bf16.msrb.mxu3 %v1184_v53  ;;  %660 = vmatpush.bf16.msrb.mxu1 %v1008_v9  ;;  %v1125_v53 = vld [vmem:[%s1941_s3 + $0x188] sm:$0xf0] }
  0x46   :  { %v1128_v58 = vor.u32 %v1313_v43, %v1125_v53 }
  0x47   :  { %648 = vmatpush.bf16.msrb.mxu0 %v936_v17  ;;  %v1331_v17 = vld [vmem:[%s1944_s5 + $0x10] sm:$0xff] }
  0x48   :  { %668 = vmatpush.bf16.msrb.mxu2 %v1112_v62 }
  0x49   :  { %681 = vmatpush.bf16.msrb.mxu3 %v1176_v1  ;;  %661 = vmatpush.bf16.msrb.mxu1 %v1000_v21  ;;  %v1329_v21 = vld [vmem:[%s1944_s5] sm:$0xff] }
  0x4c   :  { %669 = vmatpush.bf16.msrb.mxu2 %v1104_v10 }
  0x4d   :  { %682 = vmatpush.bf16.msrb.mxu3 %v1168_v13  ;;  %v1334_v13 = vld [vmem:[%s1944_s5 + $0x28] sm:$0xff] }
  0x50   :  { %670 = vmatpush.bf16.msrb.mxu2 %v1096_v22  ;;  %v1341_v22 = vld [vmem:[%s1944_s5 + $0x60] sm:$0xff] }
  0x51   :  { %683 = vmatpush.bf16.msrb.mxu3 %v1160_v25 }
  0x54   :  { %671 = vmatpush.bf16.msrb.mxu2 %v1088_v29 }
  0x55   :  { %684 = vmatpush.bf16.msrb.mxu3 %v1152_v31  ;;  %v1337_v31 = vld [vmem:[%s1944_s5 + $0x40] sm:$0xff] }
  0x58   :  { %672 = vmatpush.bf16.msrb.mxu2 %v1080_v37 }
  0x59   :  { %685 = vmatpush.bf16.msrb.mxu3 %v1144_v38 }
  0x5c   :  { %673 = vmatpush.bf16.msrb.mxu2 %v1072_v46 }
  0x5d   :  { %686 = vmatpush.bf16.msrb.mxu3 %v1136_v47 }
  0x60   :  { %674 = vmatpush.bf16.msrb.mxu2 %v1064_v56 }
  0x61   :  { %687 = vmatpush.bf16.msrb.mxu3 %v1128_v58 }
  0x96   :  { %v148_v48 = vpop.f32.mrf.mxu2 }
  0x97   :  { %v149_v51 = vadd.f32 %v148_v48, %v47_v44  ;;  %v161_v52 = vpop.f32.mrf.mxu3 }
  0x98   :  { %v162_v54 = vadd.f32 %v161_v52, %v48_v45  ;;  %v266_v45 = vperm.slane %v263_v30, 1 }
  0x99   :  { %v191_v55 = vmax.f32 %v149_v51, 0.0 }
  0x9a   :  { %v192_v57 = vmax.f32 %v162_v54, 0.0 }
  0x9b   :  { %v195_v59 = vpack.c.bf16 %v191_v55, %v191_v55 }
  0x9c   :  { %v196_v60 = vpack.c.bf16 %v192_v57, %v192_v57 }
  0x9d   :  { %597 = vmatmul.bf16.vlgmr.msra.gmra.mxu0 %v195_v59 }
  0x9e   :  { %610 = vmatmul.bf16.vlgmr.msra.gmra.mxu1 %v196_v60  ;;  %v150_v61 = vpop.f32.mrf.mxu2  ;;  %829 = vmatpush.bf16.msra.mxu0 %v1336_v11 }
  0x9f   :  { %v163_v62 = vpop.f32.mrf.mxu3  ;;  %842 = vmatpush.bf16.msra.mxu1 %v1344_v16 }
  0xa2   :  { %830 = vmatpush.bf16.msra.mxu0 %v1335_v12 }
  0xa3   :  { %843 = vmatpush.bf16.msra.mxu1 %v1343_v18 }
  0xa6   :  { %v174_v1 = vpop.f32.mrf.mxu2  ;;  %831 = vmatpush.bf16.msra.mxu0 %v1334_v13 }
  0xa7   :  { %v175_v2 = vadd.f32 %v174_v1, %v49_v63  ;;  %v187_v3 = vpop.f32.mrf.mxu3  ;;  %844 = vmatpush.bf16.msra.mxu1 %v1342_v20 }
  0xa8   :  { %v188_v4 = vadd.f32 %v187_v3, %v50_v0 }
  0xa9   :  { %v193_v5 = vmax.f32 %v175_v2, 0.0 }
  0xaa   :  { %v194_v6 = vmax.f32 %v188_v4, 0.0  ;;  %832 = vmatpush.bf16.msra.mxu0 %v1333_v14 }
  0xab   :  { %v197_v7 = vpack.c.bf16 %v193_v5, %v193_v5  ;;  %845 = vmatpush.bf16.msra.mxu1 %v1341_v22 }
  0xac   :  { %v198_v8 = vpack.c.bf16 %v194_v6, %v194_v6 }
  0xad   :  { %623 = vmatmul.bf16.vlgmr.msra.gmra.mxu2 %v197_v7  ;;  %649 = vmatmul.bf16.vlgmr.msrb.gmra.mxu0 %v195_v59 }
  0xae   :  { %636 = vmatmul.bf16.vlgmr.msra.gmra.mxu3 %v198_v8  ;;  %662 = vmatmul.bf16.vlgmr.msrb.gmra.mxu1 %v196_v60  ;;  %v176_v9 = vpop.f32.mrf.mxu2  ;;  %v1345_v60 = vld [vmem:[%s1943_s6] ss:$0 sm:$0xff] }
  0xaf   :  { %v189_v10 = vpop.f32.mrf.mxu3  ;;  %833 = vmatpush.bf16.msra.mxu0 %v1332_v15  ;;  %846 = vmatpush.bf16.msra.mxu1 %v1340_v23 }
  0xb3   :  { %834 = vmatpush.bf16.msra.mxu0 %v1331_v17  ;;  %847 = vmatpush.bf16.msra.mxu1 %v1339_v26 }
  0xb7   :  { %835 = vmatpush.bf16.msra.mxu0 %v1330_v19  ;;  %848 = vmatpush.bf16.msra.mxu1 %v1338_v27 }
  0xbb   :  { %836 = vmatpush.bf16.msra.mxu0 %v1329_v21  ;;  %849 = vmatpush.bf16.msra.mxu1 %v1337_v31 }
  0xbd   :  { %675 = vmatmul.bf16.vlgmr.msrb.gmra.mxu2 %v197_v7 }
  0xbe   :  { %688 = vmatmul.bf16.vlgmr.msrb.gmra.mxu3 %v198_v8 }
 0x11a   :  { %v598_v24 = vpop.f32.mrf.mxu0 }
 0x11b   :  { %v611_v25 = vpop.f32.mrf.mxu1  ;;  %v599_v34 = vadd.f32 %v598_v24, %v265_v32 }
 0x11d   :  { %v612_v36 = vadd.f32 %v611_v25, %v599_v34 }
 0x122   :  { %v600_v28 = vpop.f32.mrf.mxu0 }
 0x123   :  { %v613_v29 = vpop.f32.mrf.mxu1 }
 0x12a   :  { %v650_v33 = vpop.f32.mrf.mxu0 }
 0x12b   :  { %v663_v35 = vpop.f32.mrf.mxu1  ;;  %v651_v49 = vadd.f32 %v650_v33, %v266_v45 }
 0x12d   :  { %v664_v50 = vadd.f32 %v663_v35, %v651_v49 }
 0x130   :  { %v624_v37 = vpop.f32.mrf.mxu2 }
 0x131   :  { %v625_v38 = vadd.f32 %v624_v37, %v612_v36  ;;  %v637_v39 = vpop.f32.mrf.mxu3 }
 0x132   :  { %v652_v40 = vpop.f32.mrf.mxu0 }
 0x133   :  { %v638_v41 = vadd.f32 %v637_v39, %v625_v38  ;;  %v665_v42 = vpop.f32.mrf.mxu1 }
 0x135   :  { %v693_v44 = vmax.f32 %v638_v41, 0.0 }
 0x137   :  { %v695_v46 = vpack.c.bf16 %v693_v44, %v693_v44 }
 0x138   :  { %v626_v47 = vpop.f32.mrf.mxu2 }
 0x139   :  { %v639_v48 = vpop.f32.mrf.mxu3  ;;  %837 = vmatmul.bf16.vlgmr.msra.gmra.mxu0 %v695_v46 }
 0x140   :  { %v676_v51 = vpop.f32.mrf.mxu2 }
 0x141   :  { %v677_v52 = vadd.f32 %v676_v51, %v664_v50  ;;  %v689_v43 = vpop.f32.mrf.mxu3 }
 0x143   :  { %v690_v53 = vadd.f32 %v689_v43, %v677_v52 }
 0x145   :  { %v694_v54 = vmax.f32 %v690_v53, 0.0 }
 0x147   :  { %v696_v55 = vpack.c.bf16 %v694_v54, %v694_v54 }
 0x148   :  { %v678_v56 = vpop.f32.mrf.mxu2 }
 0x149   :  { %v691_v57 = vpop.f32.mrf.mxu3  ;;  %850 = vmatmul.bf16.vlgmr.msra.gmra.mxu1 %v696_v55 }
 0x1b6   :  { %v838_v58 = vpop.f32.mrf.mxu0 }
 0x1b7   :  { %v839_v61 = vadd.f32 %v1345_v60, %v838_v58 }
 0x1be   :  { %v840_v59 = vpop.f32.mrf.mxu0 }
 0x1c6   :  { %v851_v62 = vpop.f32.mrf.mxu1 }
 0x1c7   :  { %v852_v63 = vadd.f32 %v851_v62, %v839_v61 }
 0x1c9   :  { %v855_v0 = vpack.c.bf16 %v852_v63, %v852_v63 }
 0x1cb   :  { %856 = vst [vmem:[%s1946_s7] sm:$0xf] %v855_v0 }
 0x1ce   :  { %v853_v1 = vpop.f32.mrf.mxu1 }

</bundles_post_ra>
